<compile_context>
chip_gen: v6e
topology: v6e:2x2x1
jax: 0.10.0
libtpu: 0.0.40
codegen_flags: <defaults>
</compile_context>

<pallas_src>
import functools
import math

import jax
import jax.numpy as jnp
import numpy as np
from jax.experimental import pallas as pl
from jax.experimental.pallas import tpu as pltpu

TEMPERATURE = 0.07
EPS_NORM = 1e-12          # F.normalize(p=2) clamp
_SUBLANE_ALIGN = 16       # bf16 sublane packing (also valid for f32)


def _round_up(x, m):
    return ((x + m - 1) // m) * m


def _choose_row_tile(two_b, block_rows):
    tr = min(_round_up(max(block_rows, 1), _SUBLANE_ALIGN),
             _round_up(two_b, _SUBLANE_ALIGN))
    n_r = -(-two_b // tr)
    if n_r % 2 == 1 and two_b > _SUBLANE_ALIGN:
        # Prefer an even number of row blocks (>=2) so the 'parallel' row axis splits
        # evenly across both TensorCores on v7x megacore.
        tr_even = _round_up(-(-two_b // (n_r + 1)), _SUBLANE_ALIGN)
        if -(-two_b // tr_even) % 2 == 0:
            tr = tr_even
    return max(tr, _SUBLANE_ALIGN)


def _choose_col_tile(two_b, block_cols):
    tc = min(_round_up(max(block_cols, 1), _SUBLANE_ALIGN),
             _round_up(two_b, _SUBLANE_ALIGN))
    return max(tc, _SUBLANE_ALIGN)


def _pad_rows(x, rows):
    if x.shape[0] == rows:
        return x
    return jnp.zeros((rows,) + x.shape[1:], x.dtype).at[: x.shape[0]].set(x)


def _hardcon_kernel(featr_ref, featc_ref, pm_ref, logpos_ref, out_ref,
                    sum_neg, sum_sq, *,
                    contrast_type, batch, two_b, tc, col_resident):
    r = pl.program_id(0)
    c = pl.program_id(1)
    n_c = pl.num_programs(1)

    @pl.when(c == 0)
    def _():
        sum_neg[...] = jnp.zeros_like(sum_neg)
        sum_sq[...] = jnp.zeros_like(sum_sq)

    fr = featr_ref[...]                       # (tr, D) pre-normalized, already * 1/sqrt(T)
    if col_resident:
        c0 = pl.multiple_of(c * tc, tc)
        fc = featc_ref[pl.ds(c0, tc), :]      # slice of the VMEM-resident (2B_pad, D) operand
    else:
        fc = featc_ref[...]                   # (tc, D) streamed column block
    tr = fr.shape[0]

    # (tr, tc) similarity tile, already divided by T. Contraction on the lane dim of both
    # operands (no transpose); bf16/f32 inputs, f32 MXU accumulation.
    sim = jax.lax.dot_general(fr, fc, (((1,), (1,)), ((), ())),
                              preferred_element_type=jnp.float32)
    expsim = jnp.exp(sim)

    # Thin-iota masks: keep entries with (i mod B) != (j mod B); drop padded columns.
    rid = jax.lax.broadcasted_iota(jnp.int32, (tr, 1), 0) + r * tr
    cid = jax.lax.broadcasted_iota(jnp.int32, (1, tc), 1) + c * tc
    rmod = jnp.where(rid >= batch, rid - batch, rid)
    cmod = jnp.where(cid >= batch, cid - batch, cid)
    kept = jnp.logical_and(rmod != cmod, cid < two_b)     # (tr, tc) via broadcast

    neg = jnp.where(kept, expsim, 0.0)
    # TODO(synk): optional XLU->VPU rebalance: accumulate into a (tr,128) lane-wide scratch and
    # do a single cross-lane reduce at finalize if XLU becomes the saturated slot (small D).
    sum_neg[...] += jnp.sum(neg, axis=-1, keepdims=True)
    if contrast_type == "HardNeg":
        # negimp == neg (exp(log(x)) is the identity) -> Ng uses sum(neg^2).
        sum_sq[...] += jnp.sum(neg * neg, axis=-1, keepdims=True)

    @pl.when(c == n_c - 1)
    def _():
        if contrast_type == "Orig":
            ng = sum_neg[...]
        else:  # HardNeg
            count = jnp.float32(2 * batch - 2)            # kept entries per (valid) row
            ng = sum_sq[...] / (sum_neg[...] / count)
        lp = logpos_ref[...]                              # log(pos) = possim / T (f32, wrapper)
        # -posmask * log(pos / (ng + pos)) == -posmask * (log pos - log(ng + pos))
        out_ref[...] = -pm_ref[...] * (lp - jnp.log(ng + jnp.exp(lp)))


def hardcon_loss(features_1, features_2, pairsimi, *, temperature=TEMPERATURE,
                 contrast_type="HardNeg", block_rows=512, block_cols=512,
                 compute_dtype=jnp.bfloat16, col_residency_bytes=12 << 20):
    """Returns {'instdisc_loss': scalar} matching HardConLoss.forward."""
    if contrast_type not in ("Orig", "HardNeg"):
        raise ValueError("contrast_type must be 'Orig' or 'HardNeg'")
    b, d = features_1.shape
    two_b = 2 * b

    f1 = features_1.astype(jnp.float32)
    f2 = features_2.astype(jnp.float32)
    # L2-normalize once (hoisted out of the kernel); matches F.normalize(p=2, eps=1e-12).
    f1n = f1 * jax.lax.rsqrt(jnp.maximum(jnp.sum(f1 * f1, -1, keepdims=True),
                                         EPS_NORM * EPS_NORM))
    f2n = f2 * jax.lax.rsqrt(jnp.maximum(jnp.sum(f2 * f2, -1, keepdims=True),
                                         EPS_NORM * EPS_NORM))

    # Positive-pair term, once, in f32 (O(B*D)).
    logpos = jnp.sum(f1n * f2n, axis=-1, keepdims=True) / temperature          # (B, 1)
    logpos = jnp.concatenate([logpos, logpos], axis=0)                         # (2B, 1)
    pm = (pairsimi.reshape(b, 1) == 1).astype(jnp.float32)
    posmask = jnp.concatenate([pm, pm], axis=0)                                # (2B, 1)
    # TODO(synk): the PyTorch module prints a warning when posmask.sum()==0; a data-dependent
    # host print has no clean kernel equivalent — the result is NaN in that case, same as torch.

    # Fold 1/sqrt(T) into the features so the in-kernel dot products are already sim / T.
    inv_sqrt_t = np.float32(1.0 / math.sqrt(temperature))
    feats = (jnp.concatenate([f1n, f2n], axis=0) * inv_sqrt_t).astype(compute_dtype)

    tr = _choose_row_tile(two_b, block_rows)
    tc = _choose_col_tile(two_b, block_cols)
    rows_r = _round_up(two_b, tr)        # row-operand padding (also output / posmask / logpos)
    rows_c = _round_up(two_b, tc)        # col-operand padding

    featr = _pad_rows(feats, rows_r)
    featc = _pad_rows(feats, rows_c)
    posmask_p = _pad_rows(posmask, rows_r)
    logpos_p = _pad_rows(logpos, rows_r)

    dtype_bytes = jnp.dtype(compute_dtype).itemsize
    col_resident = rows_c * d * dtype_bytes <= col_residency_bytes

    if col_resident:
        # Whole column operand stays in VMEM (constant block index -> DMA'd once).
        featc_spec = pl.BlockSpec((rows_c, d), lambda r, c: (0, 0))
    else:
        col_kwargs = {}
        if hasattr(pl, "Buffered"):
            col_kwargs["pipeline_mode"] = pl.Buffered(3)   # hide DMA latency between col tiles
        featc_spec = pl.BlockSpec((tc, d), lambda r, c: (c, 0), **col_kwargs)

    # Explicit VMEM budget (conservative) — keeps tile/residency choices portable to v7x (64 MiB).
    est = (
        2 * tr * d * dtype_bytes                                        # featr, double-buffered
        + (2 * rows_c if col_resident else 3 * tc) * d * dtype_bytes    # featc
        + 6 * tr * tc * 4                                               # sim/exp/mask temporaries
        + 8 * tr * 128 * 4                                              # (tr,1) blocks & scratch, lane-padded
    )
    vmem_limit = int(min(max(est * 3 // 2, 32 << 20), 100 << 20))

    kernel = functools.partial(
        _hardcon_kernel, contrast_type=contrast_type, batch=b, two_b=two_b,
        tc=tc, col_resident=col_resident)

    grid = (rows_r // tr, rows_c // tc)

    loss_rows = pl.pallas_call(
        kernel,
        out_shape=jax.ShapeDtypeStruct((rows_r, 1), jnp.float32),
        grid_spec=pltpu.PrefetchScalarGridSpec(
            num_scalar_prefetch=0,
            grid=grid,
            in_specs=[
                pl.BlockSpec((tr, d), lambda r, c: (r, 0)),   # row block of feats
                featc_spec,                                   # column operand
                pl.BlockSpec((tr, 1), lambda r, c: (r, 0)),   # posmask rows
                pl.BlockSpec((tr, 1), lambda r, c: (r, 0)),   # log(pos) rows
            ],
            out_specs=pl.BlockSpec((tr, 1), lambda r, c: (r, 0)),
            scratch_shapes=[
                pltpu.VMEM((tr, 1), jnp.float32),   # sum(neg)
                pltpu.VMEM((tr, 1), jnp.float32),   # sum(neg^2) (HardNeg only)
            ],
        ),
        compiler_params=pltpu.CompilerParams(
            dimension_semantics=("parallel", "arbitrary"),
            vmem_limit_bytes=vmem_limit),
    )(featr, featc, posmask_p, logpos_p)

    # Trivial O(2B) finish in the wrapper (keeps the 'parallel' row axis race-free on v7x).
    loss = jnp.sum(loss_rows[:two_b]) / jnp.sum(posmask)
    return {"instdisc_loss": loss}


# --- plain-JAX reference (direct translation of the PyTorch module) for verification ---
def hardcon_ref(f1, f2, pairsimi, temperature=TEMPERATURE, contrast_type="HardNeg"):
    f1n = f1 / jnp.maximum(jnp.linalg.norm(f1, axis=-1, keepdims=True), EPS_NORM)
    f2n = f2 / jnp.maximum(jnp.linalg.norm(f2, axis=-1, keepdims=True), EPS_NORM)
    b = f1.shape[0]
    feats = jnp.concatenate([f1n, f2n], axis=0)
    pos = jnp.exp(jnp.sum(f1n * f2n, axis=-1) / temperature)
    pos = jnp.concatenate([pos, pos], axis=0)
    all_sim = feats @ feats.T
    mask = ~jnp.tile(jnp.eye(b, dtype=bool), (2, 2))
    expsim = jnp.exp(all_sim / temperature)
    neg = jnp.where(mask, expsim, 0.0)
    pairmask = jnp.concatenate([pairsimi, pairsimi], axis=0)
    posmask = (pairmask == 1).astype(jnp.float32)
    if contrast_type == "Orig":
        ng = neg.sum(axis=-1)
    else:
        negimp = neg
        ng = (negimp * neg).sum(axis=-1) / (negimp.sum(axis=-1) / (2 * b - 2))
    loss = (-posmask * jnp.log(pos / (ng + pos))).sum() / posmask.sum()
    return loss


if __name__ == "__main__":
    B, D = 20, 64   # 2B = 40 (not a tile multiple) -> exercises the padding / mask path
    key = jax.random.PRNGKey(0)
    k1, k2, k3 = jax.random.split(key, 3)
    features_1 = jax.random.normal(k1, (B, D), dtype=jnp.float32)
    features_2 = jax.random.normal(k2, (B, D), dtype=jnp.float32)
    pairsimi = jnp.where(jax.random.bernoulli(k3, 0.6, (B,)), 1, -1).astype(jnp.int32)
    pairsimi = pairsimi.at[0].set(1)   # guarantee at least one positive pair

    ref_hn = hardcon_ref(features_1, features_2, pairsimi, contrast_type="HardNeg")
    ref_o = hardcon_ref(features_1, features_2, pairsimi, contrast_type="Orig")

    # 1) HardNeg, f32 compute, small tiles -> (3,3) grid with padded rows/cols,
    #    VMEM-resident column operand. Tight tolerance.
    out = hardcon_loss(features_1, features_2, pairsimi, contrast_type="HardNeg",
                       block_rows=16, block_cols=16, compute_dtype=jnp.float32)
    val = jax.block_until_ready(out["instdisc_loss"])
    np.testing.assert_allclose(np.asarray(val), np.asarray(ref_hn), rtol=1e-4, atol=1e-5)

    # 2) Orig branch, f32, forced-streamed column operand (exercises the multi-buffered
    #    streaming path of the featc BlockSpec).
    out_o = hardcon_loss(features_1, features_2, pairsimi, contrast_type="Orig",
                         block_rows=16, block_cols=16, compute_dtype=jnp.float32,
                         col_residency_bytes=0)
    val_o = jax.block_until_ready(out_o["instdisc_loss"])
    np.testing.assert_allclose(np.asarray(val_o), np.asarray(ref_o), rtol=1e-4, atol=1e-5)

    # 3) HardNeg, default config: bf16 MXU operands, default (large) tiles, resident column.
    #    Looser tolerance: exp(sim/T) with T=0.07 amplifies bf16 rounding of the logits.
    out_bf = hardcon_loss(features_1, features_2, pairsimi, contrast_type="HardNeg")
    val_bf = jax.block_until_ready(out_bf["instdisc_loss"])
    np.testing.assert_allclose(np.asarray(val_bf), np.asarray(ref_hn), rtol=3e-2, atol=3e-2)

    print("KERNEL_OK")
</pallas_src>

<mosaic_0001>
module attributes {stable_mosaic.version = 11 : i64} {
  func.func @_hardcon_kernel(%arg0: i32, %arg1: i32, %arg2: memref<16x64xf32, #tpu.memory_space<vmem>>, %arg3: memref<48x64xf32, #tpu.memory_space<vmem>>, %arg4: memref<16x1xf32, #tpu.memory_space<vmem>>, %arg5: memref<16x1xf32, #tpu.memory_space<vmem>>, %arg6: memref<16x1xf32, #tpu.memory_space<vmem>>, %arg7: memref<16x1xf32, #tpu.memory_space<vmem>>, %arg8: memref<16x1xf32, #tpu.memory_space<vmem>>) attributes {dimension_semantics = [#tpu.dimension_semantics<parallel>, #tpu.dimension_semantics<arbitrary>], iteration_bounds = array<i64: 3, 3>, scalar_prefetch = 0 : i64, scratch_operands = 2 : i64, tpu.core_type = #tpu.core_type<tc>, window_params = [{transform_indices = @transform_0, window_bounds = array<i64: 16, 64>}, {pipeline_mode = #tpu.pipeline_mode<synchronous>, transform_indices = @transform_1, window_bounds = array<i64: 48, 64>}, {transform_indices = @transform_2, window_bounds = array<i64: 16, 1>}, {transform_indices = @transform_3, window_bounds = array<i64: 16, 1>}, {transform_indices = @transform_4, window_bounds = array<i64: 16, 1>}]} {
    %c0_i32 = arith.constant 0 : i32
    %0 = arith.cmpi eq, %arg1, %c0_i32 : i32
    %1 = arith.extui %0 : i1 to i32
    %c0_i32_0 = arith.constant 0 : i32
    %2 = arith.cmpi ne, %1, %c0_i32_0 : i32
    scf.if %2 {
      %cst_20 = arith.constant 0.000000e+00 : f32
      %51 = vector.broadcast %cst_20 : f32 to vector<16x1xf32>
      %c0_21 = arith.constant 0 : index
      %c0_22 = arith.constant 0 : index
      %52 = vector.load %arg7[%c0_21, %c0_22] : memref<16x1xf32, #tpu.memory_space<vmem>>, vector<16x1xf32>
      tpu.vector_store %arg7[%c0_21, %c0_22], %51 {strides = array<i32>} : memref<16x1xf32, #tpu.memory_space<vmem>>, vector<16x1xf32>,
      %cst_23 = arith.constant 0.000000e+00 : f32
      %53 = vector.broadcast %cst_23 : f32 to vector<16x1xf32>
      %c0_24 = arith.constant 0 : index
      %c0_25 = arith.constant 0 : index
      %54 = vector.load %arg8[%c0_24, %c0_25] : memref<16x1xf32, #tpu.memory_space<vmem>>, vector<16x1xf32>
      tpu.vector_store %arg8[%c0_24, %c0_25], %53 {strides = array<i32>} : memref<16x1xf32, #tpu.memory_space<vmem>>, vector<16x1xf32>,
    } else {
    }
    %c0 = arith.constant 0 : index
    %c0_1 = arith.constant 0 : index
    %3 = vector.load %arg2[%c0, %c0_1] : memref<16x64xf32, #tpu.memory_space<vmem>>, vector<16x64xf32>
    %c16_i32 = arith.constant 16 : i32
    %4 = arith.muli %arg1, %c16_i32 : i32
    %5 = tpu.assume_multiple %4, 16 : i32
    %6 = arith.index_cast %5 : i32 to index
    %c0_2 = arith.constant 0 : index
    %7 = vector.load %arg3[%6, %c0_2] : memref<48x64xf32, #tpu.memory_space<vmem>>, vector<16x64xf32>
    %cst = arith.constant dense<0.000000e+00> : vector<16x16xf32>
    %8 = tpu.matmul %3, %7, %cst {dimension_numbers = #tpu.dot_dimension_numbers<[1], [1], [0], [0], [0, 0, 1, 0], [], []>} : vector<16x64xf32>, vector<16x64xf32>, vector<16x16xf32> -> vector<16x16xf32>
    %9 = math.exp %8 : vector<16x16xf32>
    %10 = tpu.iota {dimensions = array<i32: 0>} : vector<16x1xi32>
    %c16_i32_3 = arith.constant 16 : i32
    %11 = arith.muli %arg0, %c16_i32_3 : i32
    %12 = vector.broadcast %11 : i32 to vector<16x1xi32>
    %13 = arith.addi %10, %12 : vector<16x1xi32>
    %14 = tpu.iota {dimensions = array<i32: 1>} : vector<1x16xi32>
    %c16_i32_4 = arith.constant 16 : i32
    %15 = arith.muli %arg1, %c16_i32_4 : i32
    %16 = vector.broadcast %15 : i32 to vector<1x16xi32>
    %17 = arith.addi %14, %16 : vector<1x16xi32>
    %c20_i32 = arith.constant 20 : i32
    %18 = vector.broadcast %c20_i32 : i32 to vector<16x1xi32>
    %19 = arith.cmpi sge, %13, %18 : vector<16x1xi32>
    %c20_i32_5 = arith.constant 20 : i32
    %20 = vector.broadcast %c20_i32_5 : i32 to vector<16x1xi32>
    %21 = arith.subi %13, %20 : vector<16x1xi32>
    %22 = arith.select %19, %21, %13 : vector<16x1xi1>, vector<16x1xi32>
    %c20_i32_6 = arith.constant 20 : i32
    %23 = vector.broadcast %c20_i32_6 : i32 to vector<1x16xi32>
    %24 = arith.cmpi sge, %17, %23 : vector<1x16xi32>
    %c20_i32_7 = arith.constant 20 : i32
    %25 = vector.broadcast %c20_i32_7 : i32 to vector<1x16xi32>
    %26 = arith.subi %17, %25 : vector<1x16xi32>
    %27 = arith.select %24, %26, %17 : vector<1x16xi1>, vector<1x16xi32>
    %28 = vector.broadcast %22 : vector<16x1xi32> to vector<16x16xi32>
    %29 = vector.broadcast %27 : vector<1x16xi32> to vector<16x16xi32>
    %30 = arith.cmpi ne, %28, %29 : vector<16x16xi32>
    %c40_i32 = arith.constant 40 : i32
    %31 = vector.broadcast %c40_i32 : i32 to vector<1x16xi32>
    %32 = arith.cmpi slt, %17, %31 : vector<1x16xi32>
    %33 = vector.broadcast %32 : vector<1x16xi1> to vector<16x16xi1>
    %34 = arith.andi %30, %33 : vector<16x16xi1>
    %cst_8 = arith.constant 0.000000e+00 : f32
    %35 = vector.broadcast %cst_8 : f32 to vector<16x16xf32>
    %36 = arith.select %34, %9, %35 : vector<16x16xi1>, vector<16x16xf32>
    %c0_9 = arith.constant 0 : index
    %c0_10 = arith.constant 0 : index
    %37 = vector.load %arg7[%c0_9, %c0_10] : memref<16x1xf32, #tpu.memory_space<vmem>>, vector<16x1xf32>
    %cst_11 = arith.constant dense<0.000000e+00> : vector<16xf32>
    %38 = vector.multi_reduction <add>, %36, %cst_11 [1] : vector<16x16xf32> to vector<16xf32>
    %39 = vector.shape_cast %38 : vector<16xf32> to vector<16x1xf32>
    %40 = arith.addf %37, %39 : vector<16x1xf32>
    %c0_12 = arith.constant 0 : index
    %c0_13 = arith.constant 0 : index
    %41 = vector.load %arg7[%c0_12, %c0_13] : memref<16x1xf32, #tpu.memory_space<vmem>>, vector<16x1xf32>
    tpu.vector_store %arg7[%c0_12, %c0_13], %40 {strides = array<i32>} : memref<16x1xf32, #tpu.memory_space<vmem>>, vector<16x1xf32>,
    %c0_14 = arith.constant 0 : index
    %c0_15 = arith.constant 0 : index
    %42 = vector.load %arg8[%c0_14, %c0_15] : memref<16x1xf32, #tpu.memory_space<vmem>>, vector<16x1xf32>
    %43 = arith.mulf %36, %36 : vector<16x16xf32>
    %cst_16 = arith.constant dense<0.000000e+00> : vector<16xf32>
    %44 = vector.multi_reduction <add>, %43, %cst_16 [1] : vector<16x16xf32> to vector<16xf32>
    %45 = vector.shape_cast %44 : vector<16xf32> to vector<16x1xf32>
    %46 = arith.addf %42, %45 : vector<16x1xf32>
    %c0_17 = arith.constant 0 : index
    %c0_18 = arith.constant 0 : index
    %47 = vector.load %arg8[%c0_17, %c0_18] : memref<16x1xf32, #tpu.memory_space<vmem>>, vector<16x1xf32>
    tpu.vector_store %arg8[%c0_17, %c0_18], %46 {strides = array<i32>} : memref<16x1xf32, #tpu.memory_space<vmem>>, vector<16x1xf32>,
    %c2_i32 = arith.constant 2 : i32
    %48 = arith.cmpi eq, %arg1, %c2_i32 : i32
    %49 = arith.extui %48 : i1 to i32
    %c0_i32_19 = arith.constant 0 : i32
    %50 = arith.cmpi ne, %49, %c0_i32_19 : i32
    scf.if %50 {
      %c0_20 = arith.constant 0 : index
      %c0_21 = arith.constant 0 : index
      %51 = vector.load %arg8[%c0_20, %c0_21] : memref<16x1xf32, #tpu.memory_space<vmem>>, vector<16x1xf32>
      %c0_22 = arith.constant 0 : index
      %c0_23 = arith.constant 0 : index
      %52 = vector.load %arg7[%c0_22, %c0_23] : memref<16x1xf32, #tpu.memory_space<vmem>>, vector<16x1xf32>
      %cst_24 = arith.constant 3.800000e+01 : f32
      %53 = vector.broadcast %cst_24 : f32 to vector<16x1xf32>
      %54 = arith.divf %52, %53 : vector<16x1xf32>
      %55 = arith.divf %51, %54 : vector<16x1xf32>
      %c0_25 = arith.constant 0 : index
      %c0_26 = arith.constant 0 : index
      %56 = vector.load %arg5[%c0_25, %c0_26] : memref<16x1xf32, #tpu.memory_space<vmem>>, vector<16x1xf32>
      %c0_27 = arith.constant 0 : index
      %c0_28 = arith.constant 0 : index
      %57 = vector.load %arg4[%c0_27, %c0_28] : memref<16x1xf32, #tpu.memory_space<vmem>>, vector<16x1xf32>
      %cst_29 = arith.constant 0.000000e+00 : f32
      %58 = vector.broadcast %cst_29 : f32 to vector<16x1xf32>
      %59 = arith.subf %58, %57 : vector<16x1xf32>
      %60 = math.exp %56 : vector<16x1xf32>
      %61 = arith.addf %55, %60 : vector<16x1xf32>
      %62 = math.log %61 : vector<16x1xf32>
      %63 = arith.subf %56, %62 : vector<16x1xf32>
      %64 = arith.mulf %59, %63 : vector<16x1xf32>
      %c0_30 = arith.constant 0 : index
      %c0_31 = arith.constant 0 : index
      %65 = vector.load %arg6[%c0_30, %c0_31] : memref<16x1xf32, #tpu.memory_space<vmem>>, vector<16x1xf32>
      tpu.vector_store %arg6[%c0_30, %c0_31], %64 {strides = array<i32>} : memref<16x1xf32, #tpu.memory_space<vmem>>, vector<16x1xf32>,
    } else {
    }
    return
  }
  func.func @transform_0(%arg0: i32, %arg1: i32) -> (i32, i32) {
    %c0_i32 = arith.constant 0 : i32
    %c0_i32_0 = arith.constant 0 : i32
    return %arg0, %c0_i32 : i32, i32
  }
  func.func @transform_1(%arg0: i32, %arg1: i32) -> (i32, i32) {
    %c0_i32 = arith.constant 0 : i32
    %c0_i32_0 = arith.constant 0 : i32
    %c0_i32_1 = arith.constant 0 : i32
    return %c0_i32, %c0_i32_0 : i32, i32
  }
  func.func @transform_2(%arg0: i32, %arg1: i32) -> (i32, i32) {
    %c0_i32 = arith.constant 0 : i32
    %c0_i32_0 = arith.constant 0 : i32
    return %arg0, %c0_i32 : i32, i32
  }
  func.func @transform_3(%arg0: i32, %arg1: i32) -> (i32, i32) {
    %c0_i32 = arith.constant 0 : i32
    %c0_i32_0 = arith.constant 0 : i32
    return %arg0, %c0_i32 : i32, i32
  }
  func.func @transform_4(%arg0: i32, %arg1: i32) -> (i32, i32) {
    %c0_i32 = arith.constant 0 : i32
    %c0_i32_0 = arith.constant 0 : i32
    return %arg0, %c0_i32 : i32, i32
  }
}

</mosaic_0001>

<bundles_post_ra>
// kernel: tpu_custom_call.1
= control target key start
LH: loop header
LB: loop body
LE: loop exit
PB: predicated region body
PF: predicated region fallthrough
CT: control target
= control target key end

     0   :  { %s712_s15 = smov 0   ;;  %s714_s16 = smov 0   ;;  %s799_s0 = inlined_call_operand.vmem [shape: f32[48,64], index: 0, kind: input, shape index: {}]   ;;  %s800_s1 = inlined_call_operand.vmem [shape: f32[48,64], index: 1, kind: input, shape index: {}]   ;;  %s801_s2 = inlined_call_operand.vmem [shape: f32[48,1], index: 2, kind: input, shape index: {}]   ;;  %s802_s3 = inlined_call_operand.vmem [shape: f32[48,1], index: 3, kind: input, shape index: {}]   ;;  %s803_s4 = inlined_call_operand.vmem [shape: f32[48,1], index: 4, kind: output, shape index: {}]  }
   0x1   :  { %s716_s17 = smov 0   ;;  %s718_s18 = smov 0  }
   0x2   :  { %s720_s19 = smov 0  }
   0x3 LB: > { %s23_s20 = sadd.s32 1, %s676_s17  ;;  %s26_s21 = sadd.s32 1, %s680_s18  ;;  %s684_s19 = sphi %s720_s19, %s14_s19   ;;  %s680_s18 = sphi %s718_s18, %s807_s18   ;;  %s676_s17 = sphi %s716_s17, %s806_s17   ;;  %s672_s16 = sphi %s714_s16, %s805_s16   ;;  %s668_s15 = sphi %s712_s15, %s804_s15  }
   0x4   : > { %p24_p0 = scmp.ge.s32.totalorder %s23_s20, 3  ;;  %p556_p1 = scmp.ge.s32.totalorder %s684_s19, 1 }
   0x5   : > { %p197_p2 = scmp.lt.s32.totalorder %s684_s19, 10 }
   0x6   : > { %s809_s20 = smov (%p24_p0, %s23_s20), 0  ;;  %s811_s21 = smov (!%p24_p0, %s26_s21), %s680_s18 }
   0x7   : > { %p198_p3 = pnand %p556_p1, %p197_p2  ;;  %p28_p4 = scmp.ge.s32.totalorder %s811_s21, 3 }
   0x8   : > { %s557_s22 = sshll.u32 (!%p198_p3), %s672_s16, 1  ;;  %p565_p6 = scmp.ne.s32.totalorder (!%p198_p3), %s668_s15, 0 }
   0x9   : > { %s813_s21 = smov (%p28_p4, %s811_s21), 0  ;;  %201 = sbr.rel (%p198_p3) target bundleno = 439 (0x1b7), region = 36 }
   0xa   : > { %p234_p5 = scmp.lt.s32.totalorder (!%p198_p3), %s557_s22, 5 }
   0xe   : > { %s815_s22 = smov (!%p234_p5, %s557_s22), 5  ;;  %260 = sbr.rel (%p565_p6) target bundleno = 22 (0x16), region = 40 }
   0xf   : > { %s558_s23 = sshll.u32 %s815_s22, 3 }
  0x10   : > { %s237_s26 = scalar_lea.vmem %s799_s0, %s558_s23  ;;  %s753_s29 = scalar_lea.vmem %s801_s2, %s558_s23 }
  0x11   : > { %s758_s6 = scalar_lea.vmem %s802_s3, %s558_s23  ;;  %s763_s9 = scalar_lea.vmem %s803_s4, %s558_s23 }
  0x13   : > { %vm261_vm0 = vcmask 7168   ;;  %v686_v0 = vmov 0.0  }
  0x14   : > { %262 = vst.msk [vmem:[#allocation2] sm:$0xff] %vm261_vm0, %v686_v0  ;;  %263 = vst.msk [vmem:[#allocation2 + $0x8] sm:$0xff] %vm261_vm0, %v686_v0 }
  0x15   : > { %264 = vst.msk [vmem:[#allocation3] sm:$0xff] %vm261_vm0, %v686_v0  ;;  %265 = vst.msk [vmem:[#allocation3 + $0x8] sm:$0xff] %vm261_vm0, %v686_v0 }
  0x16 PF: > { %s566_s10 = sshll.u32 %s668_s15, 4  ;;  %vm272_vm1 = vcmask 523264   ;;  %v266_v1 = vld [vmem:[%s237_s26] sm:$0xff]  ;;  %v267_v4 = vld [vmem:[%s237_s26 + $0x8] sm:$0xff]  ;;  %v364_v5 = vlaneseq  ;;  %s571_s14 = sshll.u32 %s672_s16, 4  ;;  %vm395_vm10 = vcmask 130048  }
  0x17   : > { %s269_s13 = scalar_lea.vmem %s800_s1, %s566_s10  ;;  %586 = vmatprep.mubr.msk.f32.mxu0 %vm272_vm1, %v266_v1  ;;  %v373_v9 = vstv %s566_s10  ;;  %v368_v10 = vstv %s571_s14  ;;  %vm404_vm11 = vcmask 7168   ;;  %p575_p7 = scmp.ne.s32.totalorder %s668_s15, 2 }
  0x18   : > { %v270_v2 = vld [vmem:[%s269_s13] sm:$0xff]  ;;  %v271_v3 = vld [vmem:[%s269_s13 + $0x8] sm:$0xff]  ;;  %v365_v6 = vshrl.u32 %v364_v5, 7  ;;  %v372_v7 = vand.u32 127, %v364_v5 }
  0x19   : > { %582 = vmatprep.subr.msk.mxu0 %vm272_vm1, %v271_v3 }
  0x1a   : > { %583 = vmatpush3.xpose.msk.msra.mxu0 %vm272_vm1, %v271_v3  ;;  %v366_v8 = vadd.s32 8, %v365_v6  ;;  %v369_v13 = vadd.s32 %v368_v10, %v365_v6  ;;  %v374_v14 = vadd.s32 %v373_v9, %v372_v7 }
  0x1b   : > { %584 = vmatprep.subr.msk.mxu0 %vm272_vm1, %v270_v2  ;;  %v393_v34 = vld [vmem:[#allocation2] sm:$0xff]  ;;  %v394_v39 = vld [vmem:[#allocation2 + $0x8] sm:$0xff] }
  0x1c   : > { %v370_v16 = vadd.s32 %v368_v10, %v366_v8  ;;  %v572_v18 = vadd.s32 4294967276, %v369_v13  ;;  %vm375_vm2 = vcmp.ge.s32.totalorder %v369_v13, 20  ;;  %v574_v19 = vadd.s32 4294967276, %v374_v14  ;;  %v407_v36 = vld [vmem:[#allocation3] sm:$0xff]  ;;  %v408_v42 = vld [vmem:[#allocation3 + $0x8] sm:$0xff] }
  0x1d   : > { %vm381_vm3 = vcmp.ge.s32.totalorder %v374_v14, 20  ;;  %vm386_vm6 = vcmp.lt.s32.totalorder %v374_v14, 40 }
  0x1e   : > { %585 = vmatpush3.xpose.msk.msra.mxu0 %vm272_vm1, %v270_v2  ;;  %v573_v20 = vadd.s32 4294967276, %v370_v16  ;;  %vm376_vm4 = vcmp.ge.s32.totalorder %v370_v16, 20  ;;  %v379_v21 = vsel %vm375_vm2, %v572_v18, %v369_v13  ;;  %v383_v22 = vsel %vm381_vm3, %v574_v19, %v374_v14 }
  0x1f   : > { %vm384_vm5 = vcmp.ne.s32.totalorder %v379_v21, %v383_v22 }
  0x20   : > { %v380_v23 = vsel %vm376_vm4, %v573_v20, %v370_v16  ;;  %vm389_vm8 = vmand %vm384_vm5, %vm386_vm6 }
  0x21   : > { %587 = vmatmul.mubr.msk.f32.vlgmr.msra.gmra.mxu0 %vm272_vm1, %v267_v4  ;;  %vm385_vm7 = vcmp.ne.s32.totalorder %v380_v23, %v383_v22 }
  0x22   : > { %vm390_vm9 = vmand %vm385_vm7, %vm386_vm6 }
  0xe1   : > { %v588_v11 = vpop.f32.mrf.mxu0 }
  0xe2   : > { %v362_v12 = vmul.f32 1.442695, %v588_v11 }
  0xe3   : > { %v351_v15 = vpop.f32.mrf.mxu0 }
  0xe4   : > { %630 = vpow2.f32 %v362_v12  ;;  %v360_v17 = vmul.f32 1.442695, %v351_v15 }
  0xe6   : > { %632 = vpow2.f32 %v360_v17 }
  0xf1   : > { %v631_v24 = vpop.eup %630 }
  0xf2   : > { %v392_v27 = vsel %vm390_vm9, %v631_v24, 0.0 }
  0xf3   : > { %v633_v25 = vpop.eup %632  ;;  %v410_v31 = vmul.f32 %v392_v27, %v392_v27  ;;  %v399_v32 = vsel %vm395_vm10, %v392_v27, 0.0 }
  0xf4   : > { %v391_v26 = vsel %vm389_vm8, %v633_v25, 0.0 }
  0xf5   : > { %v396_v28 = vsel %vm395_vm10, %v391_v26, 0.0  ;;  %v409_v29 = vmul.f32 %v391_v26, %v391_v26  ;;  %v414_v33 = vsel %vm395_vm10, %v410_v31, 0.0 }
  0xf6   : > { %397 = vadd.xlane.f32.xlu0 %v396_v28 }
  0xf7   : > { %v411_v30 = vsel %vm395_vm10, %v409_v29, 0.0 }
  0xf8   : > { %412 = vadd.xlane.f32.xlu1 %v411_v30 }
  0xfa   : > { %400 = vadd.xlane.f32.xlu0 %v399_v32 }
  0xfc   : > { %415 = vadd.xlane.f32.xlu1 %v414_v33 }
 0x17f   : > { %v398_v35 = vpop.xlane.xlu0 %397 }
 0x180   : > { %v402_v37 = vadd.f32 %v398_v35, %v393_v34 }
 0x181   : > { %v413_v38 = vpop.xlane.xlu1 %412 }
 0x182   : > { %405 = vst.msk [vmem:[#allocation2] sm:$0xff] %vm404_vm11, %v402_v37  ;;  %v417_v40 = vadd.f32 %v413_v38, %v407_v36 }
 0x183   : > { %v401_v41 = vpop.xlane.xlu0 %400 }
 0x184   : > { %419 = vst.msk [vmem:[#allocation3] sm:$0xff] %vm404_vm11, %v417_v40  ;;  %v403_v43 = vadd.f32 %v401_v41, %v394_v39  ;;  %424 = sbr.rel (%p575_p7) target bundleno = 439 (0x1b7), region = 44 }
 0x185   : > { %v416_v44 = vpop.xlane.xlu1 %415 }
 0x186   : > { %406 = vst.msk [vmem:[#allocation2 + $0x8] sm:$0xff] %vm404_vm11, %v403_v43  ;;  %v418_v45 = vadd.f32 %v416_v44, %v408_v42 }
 0x188   : > { %420 = vst.msk [vmem:[#allocation3 + $0x8] sm:$0xff] %vm404_vm11, %v418_v45 }
 0x189   : > { %v427_v46 = vld [vmem:[#allocation2] sm:$0xff]  ;;  %v437_v51 = vld [vmem:[%s758_s6 + $0x8] sm:$0xff] }
 0x18a   : > { %v436_v47 = vld [vmem:[%s758_s6] sm:$0xff]  ;;  %v430_v48 = vmul.f32 0.02631579, %v427_v46  ;;  %v444_v53 = vmul.f32 1.442695, %v437_v51  ;;  %v439_v2 = vld [vmem:[%s753_s29 + $0x8] sm:$0xff] }
 0x18b   : > { %v442_v49 = vmul.f32 1.442695, %v436_v47  ;;  %v425_v54 = vld [vmem:[#allocation3] sm:$0xff]  ;;  %v438_v0 = vld [vmem:[%s753_s29] sm:$0xff]  ;;  %v441_v7 = vsub.f32 0.0, %v439_v2 }
 0x18c   : > { %634 = vrcp.f32 %v430_v48  ;;  %v440_v3 = vsub.f32 0.0, %v438_v0 }
 0x18d   : > { %v428_v50 = vld [vmem:[#allocation2 + $0x8] sm:$0xff]  ;;  %636 = vpow2.f32 %v442_v49 }
 0x18e   : > { %v431_v52 = vmul.f32 0.02631579, %v428_v50 }
 0x18f   : > { %v426_v56 = vld [vmem:[#allocation3 + $0x8] sm:$0xff] }
 0x190   : > { %638 = vrcp.f32 %v431_v52 }
 0x191   : > { %640 = vpow2.f32 %v444_v53 }
 0x199   : > { %v635_v55 = vpop.eup %634 }
 0x19a   : > { %v637_v57 = vpop.eup %636  ;;  %v433_v58 = vmul.f32 %v635_v55, %v425_v54 }
 0x19c   : > { %v446_v61 = vadd.f32 %v637_v57, %v433_v58 }
 0x19d   : > { %v639_v59 = vpop.eup %638 }
 0x19e   : > { %v641_v60 = vpop.eup %640  ;;  %v435_v62 = vmul.f32 %v639_v59, %v426_v56  ;;  %642 = vlog2.f32 %v446_v61 }
 0x1a0   : > { %v447_v63 = vadd.f32 %v641_v60, %v435_v62 }
 0x1a2   : > { %644 = vlog2.f32 %v447_v63 }
 0x1ab   : > { %v643_v1 = vpop.eup %642 }
 0x1ac   : > { %v449_v4 = vmul.f32 0.6931472, %v643_v1 }
 0x1ae   : > { %v452_v6 = vsub.f32 %v436_v47, %v449_v4 }
 0x1af   : > { %v645_v5 = vpop.eup %644 }
 0x1b0   : > { %v451_v8 = vmul.f32 0.6931472, %v645_v5  ;;  %v454_v9 = vmul.f32 %v452_v6, %v440_v3 }
 0x1b2   : > { %v453_v10 = vsub.f32 %v437_v51, %v451_v8  ;;  %456 = vst.msk [vmem:[%s763_s9] sm:$0xff] %vm404_vm11, %v454_v9 }
 0x1b4   : > { %v455_v11 = vmul.f32 %v453_v10, %v441_v7 }
 0x1b6   : > { %457 = vst.msk [vmem:[%s763_s9 + $0x8] sm:$0xff] %vm404_vm11, %v455_v11 }
 0x1b7 PF: > { %s14_s19 = sadd.s32 1, %s684_s19   ;;  %s804_s15 = smov %s676_s17 }
 0x1b8   : > { %p11_p8 = scmp.ge.s32.totalorder %s14_s19, 11   ;;  %s805_s16 = smov %s680_s18 }
 0x1b9   : > { %s806_s17 = smov %s809_s20  ;;  %s807_s18 = smov %s813_s21 }
 0x1ba   :  { %13 = sbr.rel (!%p11_p8) target bundleno = 3 (0x3), region = 81 }

</bundles_post_ra>
